<compile_context>
chip_gen: v5e
topology: v5e:2x2
jax: 0.10.0
libtpu: 0.0.40
codegen_flags: <defaults>
</compile_context>

<pallas_src>
import functools

import jax
import jax.numpy as jnp
from jax import lax
from jax.experimental import pallas as pl
from jax.experimental.pallas import tpu as pltpu


def _round_up(a: int, b: int) -> int:
    return -(-a // b) * b


def proto_sim_kernel(ids_ref, emb_ref, table_ref, w_ref, b_ref,
                     logits_ref, dist_ref):
    """One batch tile.

    ids_ref    : (TN, 1) int32   role ids for this tile
    emb_ref    : (TN, E) f32     role embeddings for this tile
    table_ref  : (R, E)  f32     prototype embedding table (VMEM-resident)
    w_ref      : (R, E)  f32     classifier weight (VMEM-resident)
    b_ref      : (1, R)  f32     classifier bias (VMEM-resident)
    logits_ref : (TN, R) f32     classification_layer(normalized protos)
    dist_ref   : (TN, 1) f32     1 - 1/(1 + exp(cosine_similarity))
    """
    ids = ids_ref[...]                                    # (TN, 1) int32
    emb = emb_ref[...]                                    # (TN, E) f32
    table = table_ref[...]                                # (R, E)  f32

    tn, e = emb.shape
    num_roles = table.shape[0]                            # static

    # ---- Embedding gather.
    if num_roles <= 16:
        # Tiny vocab: R-wide VPU select chain; avoids materializing a one-hot
        # matrix and an MXU round-trip at tiny contraction width.
        protos = jnp.zeros((tn, e), jnp.float32)
        for r in range(num_roles):
            protos = jnp.where(ids == r, table[r:r + 1, :], protos)
    else:
        # Large vocab: exact one-hot matmul (rows are {0.0, 1.0}) on the MXU.
        one_hot = (ids == lax.broadcasted_iota(jnp.int32, (tn, num_roles), 1))
        protos = jnp.dot(one_hot.astype(jnp.float32), table,
                         preferred_element_type=jnp.float32)

    # ---- L2 normalize prototypes via rsqrt (EUP); matches F.normalize eps:
    #      x / max(||x||, 1e-12)  ==  x * rsqrt(max(||x||^2, 1e-24))
    p_sumsq = jnp.sum(protos * protos, axis=-1, keepdims=True)
    protos_n = protos * lax.rsqrt(jnp.maximum(p_sumsq, 1e-24))

    # ---- Cosine similarity without materializing normalized embeddings.
    e_sumsq = jnp.sum(emb * emb, axis=-1, keepdims=True)
    sim = (jnp.sum(protos_n * emb, axis=-1, keepdims=True)
           * lax.rsqrt(jnp.maximum(e_sumsq, 1e-24)))      # (TN, 1)

    # ---- dist = 1 - 1/(1 + exp(sim)); exp on the EUP, divide on a (TN, 1).
    dist_ref[...] = 1.0 - 1.0 / (1.0 + jnp.exp(sim))

    # ---- Classification on normalized prototypes: protos_n @ W^T + b.
    #      W passed untransposed (R, E); contract over E in-kernel.
    logits_ref[...] = lax.dot_general(
        protos_n, w_ref[...],
        dimension_numbers=(((1,), (1,)), ((), ())),
        preferred_element_type=jnp.float32,
    ) + b_ref[...]


@functools.partial(jax.jit, static_argnames=("tn_max",))
def proto_sim_forward(proto_table, cls_w, cls_b, role_embedding, role_id,
                      *, tn_max=2048):
    """proto_table: (R, E), cls_w: (R, E), cls_b: (R,),
    role_embedding: (N, E), role_id: (N,) int.
    Returns (dist (N,), predict_role (N, R))."""
    N, E = role_embedding.shape
    R = proto_table.shape[0]

    # Batch tile: large enough to amortize per-step pipeline overhead, capped
    # so large N still yields >=4 grid steps (keeps both v7x TensorCores busy
    # under dimension_semantics=("parallel",)).  Kernel blocks stay (8,128)-
    # legal because the last dims (1, E, R) all equal the full array dims.
    TN = min(tn_max, max(8, _round_up(-(-N // 4), 8)))
    grid = (pl.cdiv(N, TN),)

    ids = role_id.astype(jnp.int32).reshape(N, 1)
    emb = role_embedding.astype(jnp.float32)
    table = proto_table.astype(jnp.float32)
    w = cls_w.astype(jnp.float32)
    b = cls_b.astype(jnp.float32).reshape(1, R)

    logits, dist = pl.pallas_call(
        proto_sim_kernel,
        out_shape=(jax.ShapeDtypeStruct((N, R), jnp.float32),
                   jax.ShapeDtypeStruct((N, 1), jnp.float32)),
        grid=grid,
        in_specs=[
            pl.BlockSpec((TN, 1), lambda i: (i, 0)),   # role ids    (streamed)
            pl.BlockSpec((TN, E), lambda i: (i, 0)),   # embeddings  (streamed)
            pl.BlockSpec((R, E), lambda i: (0, 0)),    # proto table (resident)
            pl.BlockSpec((R, E), lambda i: (0, 0)),    # cls weight  (resident)
            pl.BlockSpec((1, R), lambda i: (0, 0)),    # cls bias    (resident)
        ],
        out_specs=(
            pl.BlockSpec((TN, R), lambda i: (i, 0)),   # logits
            pl.BlockSpec((TN, 1), lambda i: (i, 0)),   # dist
        ),
        compiler_params=pltpu.CompilerParams(
            dimension_semantics=("parallel",),
        ),
    )(ids, emb, table, w, b)

    return dist[:, 0], logits


if __name__ == "__main__":
    # Small shapes consistent with the module:
    #   rhetorical_role R = 4, embedding_width E = 32, batch N = 8
    R, E, N = 4, 32, 8

    key = jax.random.PRNGKey(0)
    k_tab, k_w, k_b, k_emb, k_id = jax.random.split(key, 5)

    # Deterministic synthetic parameters (shapes from nn.Embedding / nn.Linear).
    proto_table = jax.random.normal(k_tab, (R, E), dtype=jnp.float32)
    bound = 1.0 / (E ** 0.5)
    cls_w = jax.random.uniform(k_w, (R, E), jnp.float32, -bound, bound)
    cls_b = jax.random.uniform(k_b, (R,), jnp.float32, -bound, bound)

    role_embedding = jax.random.normal(k_emb, (N, E), dtype=jnp.float32)
    role_id = jax.random.randint(k_id, (N,), 0, R, dtype=jnp.int32)

    dist, predict_role = proto_sim_forward(
        proto_table, cls_w, cls_b, role_embedding, role_id
    )
    jax.block_until_ready((dist, predict_role))

    # Reference check in plain JAX (mirrors the PyTorch forward).
    protos_ref = proto_table[role_id]
    protos_ref = protos_ref / jnp.maximum(
        jnp.linalg.norm(protos_ref, axis=-1, keepdims=True), 1e-12)
    emb_ref = role_embedding / jnp.maximum(
        jnp.linalg.norm(role_embedding, axis=-1, keepdims=True), 1e-12)
    sim_ref = jnp.exp(jnp.sum(protos_ref * emb_ref, axis=-1))
    dist_ref = 1.0 - 1.0 / (1.0 + sim_ref)
    pred_ref = protos_ref @ cls_w.T + cls_b

    assert dist.shape == (N,) and predict_role.shape == (N, R)
    assert jnp.allclose(dist, dist_ref, atol=1e-5)
    assert jnp.allclose(predict_role, pred_ref, atol=1e-5)

    # TODO(synk): loss helpers (get_*_loss / CrossEntropyLoss) are training-side
    # reductions outside forward(); not implemented as kernels.

    print("KERNEL_OK")
</pallas_src>

<mosaic_0001>
module attributes {stable_mosaic.version = 11 : i64} {
  func.func @proto_sim_kernel(%arg0: i32, %arg1: memref<8x1xi32, #tpu.memory_space<vmem>>, %arg2: memref<8x32xf32, #tpu.memory_space<vmem>>, %arg3: memref<4x32xf32, #tpu.memory_space<vmem>>, %arg4: memref<4x32xf32, #tpu.memory_space<vmem>>, %arg5: memref<1x4xf32, #tpu.memory_space<vmem>>, %arg6: memref<8x4xf32, #tpu.memory_space<vmem>>, %arg7: memref<8x1xf32, #tpu.memory_space<vmem>>) attributes {dimension_semantics = [#tpu.dimension_semantics<parallel>], iteration_bounds = array<i64: 1>, scalar_prefetch = 0 : i64, scratch_operands = 0 : i64, tpu.core_type = #tpu.core_type<tc>, window_params = [{transform_indices = @transform_0, window_bounds = array<i64: 8, 1>}, {transform_indices = @transform_1, window_bounds = array<i64: 8, 32>}, {pipeline_mode = #tpu.pipeline_mode<synchronous>, transform_indices = @transform_2, window_bounds = array<i64: 4, 32>}, {pipeline_mode = #tpu.pipeline_mode<synchronous>, transform_indices = @transform_3, window_bounds = array<i64: 4, 32>}, {pipeline_mode = #tpu.pipeline_mode<synchronous>, transform_indices = @transform_4, window_bounds = array<i64: 1, 4>}, {transform_indices = @transform_5, window_bounds = array<i64: 8, 4>}, {transform_indices = @transform_6, window_bounds = array<i64: 8, 1>}]} {
    %c0 = arith.constant 0 : index
    %c0_0 = arith.constant 0 : index
    %0 = vector.load %arg1[%c0, %c0_0] : memref<8x1xi32, #tpu.memory_space<vmem>>, vector<8x1xi32>
    %c0_1 = arith.constant 0 : index
    %c0_2 = arith.constant 0 : index
    %1 = vector.load %arg2[%c0_1, %c0_2] : memref<8x32xf32, #tpu.memory_space<vmem>>, vector<8x32xf32>
    %c0_3 = arith.constant 0 : index
    %c0_4 = arith.constant 0 : index
    %2 = vector.load %arg3[%c0_3, %c0_4] : memref<4x32xf32, #tpu.memory_space<vmem>>, vector<4x32xf32>
    %cst = arith.constant 0.000000e+00 : f32
    %3 = vector.broadcast %cst : f32 to vector<8x32xf32>
    %c0_i32 = arith.constant 0 : i32
    %4 = vector.broadcast %c0_i32 : i32 to vector<8x1xi32>
    %5 = arith.cmpi eq, %0, %4 : vector<8x1xi32>
    %6 = vector.extract_strided_slice %2 {offsets = [0, 0], sizes = [1, 32], strides = [1, 1]} : vector<4x32xf32> to vector<1x32xf32>
    %7 = vector.shape_cast %5 : vector<8x1xi1> to vector<8x1xi1>
    %8 = vector.broadcast %7 : vector<8x1xi1> to vector<8x32xi1>
    %9 = vector.shape_cast %6 : vector<1x32xf32> to vector<1x32xf32>
    %10 = vector.broadcast %9 : vector<1x32xf32> to vector<8x32xf32>
    %11 = arith.select %8, %10, %3 : vector<8x32xi1>, vector<8x32xf32>
    %c1_i32 = arith.constant 1 : i32
    %12 = vector.broadcast %c1_i32 : i32 to vector<8x1xi32>
    %13 = arith.cmpi eq, %0, %12 : vector<8x1xi32>
    %14 = vector.extract_strided_slice %2 {offsets = [1, 0], sizes = [1, 32], strides = [1, 1]} : vector<4x32xf32> to vector<1x32xf32>
    %15 = vector.shape_cast %13 : vector<8x1xi1> to vector<8x1xi1>
    %16 = vector.broadcast %15 : vector<8x1xi1> to vector<8x32xi1>
    %17 = vector.shape_cast %14 : vector<1x32xf32> to vector<1x32xf32>
    %18 = vector.broadcast %17 : vector<1x32xf32> to vector<8x32xf32>
    %19 = arith.select %16, %18, %11 : vector<8x32xi1>, vector<8x32xf32>
    %c2_i32 = arith.constant 2 : i32
    %20 = vector.broadcast %c2_i32 : i32 to vector<8x1xi32>
    %21 = arith.cmpi eq, %0, %20 : vector<8x1xi32>
    %22 = vector.extract_strided_slice %2 {offsets = [2, 0], sizes = [1, 32], strides = [1, 1]} : vector<4x32xf32> to vector<1x32xf32>
    %23 = vector.shape_cast %21 : vector<8x1xi1> to vector<8x1xi1>
    %24 = vector.broadcast %23 : vector<8x1xi1> to vector<8x32xi1>
    %25 = vector.shape_cast %22 : vector<1x32xf32> to vector<1x32xf32>
    %26 = vector.broadcast %25 : vector<1x32xf32> to vector<8x32xf32>
    %27 = arith.select %24, %26, %19 : vector<8x32xi1>, vector<8x32xf32>
    %c3_i32 = arith.constant 3 : i32
    %28 = vector.broadcast %c3_i32 : i32 to vector<8x1xi32>
    %29 = arith.cmpi eq, %0, %28 : vector<8x1xi32>
    %30 = vector.extract_strided_slice %2 {offsets = [3, 0], sizes = [1, 32], strides = [1, 1]} : vector<4x32xf32> to vector<1x32xf32>
    %31 = vector.shape_cast %29 : vector<8x1xi1> to vector<8x1xi1>
    %32 = vector.broadcast %31 : vector<8x1xi1> to vector<8x32xi1>
    %33 = vector.shape_cast %30 : vector<1x32xf32> to vector<1x32xf32>
    %34 = vector.broadcast %33 : vector<1x32xf32> to vector<8x32xf32>
    %35 = arith.select %32, %34, %27 : vector<8x32xi1>, vector<8x32xf32>
    %36 = arith.mulf %35, %35 : vector<8x32xf32>
    %cst_5 = arith.constant dense<0.000000e+00> : vector<8xf32>
    %37 = vector.multi_reduction <add>, %36, %cst_5 [1] : vector<8x32xf32> to vector<8xf32>
    %38 = vector.shape_cast %37 : vector<8xf32> to vector<8x1xf32>
    %cst_6 = arith.constant 1.000000e-24 : f32
    %39 = vector.broadcast %cst_6 : f32 to vector<8x1xf32>
    %40 = arith.maximumf %38, %39 : vector<8x1xf32>
    %41 = math.rsqrt %40 : vector<8x1xf32>
    %42 = vector.broadcast %41 : vector<8x1xf32> to vector<8x32xf32>
    %43 = arith.mulf %35, %42 : vector<8x32xf32>
    %44 = arith.mulf %1, %1 : vector<8x32xf32>
    %cst_7 = arith.constant dense<0.000000e+00> : vector<8xf32>
    %45 = vector.multi_reduction <add>, %44, %cst_7 [1] : vector<8x32xf32> to vector<8xf32>
    %46 = vector.shape_cast %45 : vector<8xf32> to vector<8x1xf32>
    %47 = arith.mulf %43, %1 : vector<8x32xf32>
    %cst_8 = arith.constant dense<0.000000e+00> : vector<8xf32>
    %48 = vector.multi_reduction <add>, %47, %cst_8 [1] : vector<8x32xf32> to vector<8xf32>
    %49 = vector.shape_cast %48 : vector<8xf32> to vector<8x1xf32>
    %cst_9 = arith.constant 1.000000e-24 : f32
    %50 = vector.broadcast %cst_9 : f32 to vector<8x1xf32>
    %51 = arith.maximumf %46, %50 : vector<8x1xf32>
    %52 = math.rsqrt %51 : vector<8x1xf32>
    %53 = arith.mulf %49, %52 : vector<8x1xf32>
    %54 = math.exp %53 : vector<8x1xf32>
    %cst_10 = arith.constant 1.000000e+00 : f32
    %55 = vector.broadcast %cst_10 : f32 to vector<8x1xf32>
    %56 = arith.addf %55, %54 : vector<8x1xf32>
    %cst_11 = arith.constant 1.000000e+00 : f32
    %57 = vector.broadcast %cst_11 : f32 to vector<8x1xf32>
    %58 = arith.divf %57, %56 : vector<8x1xf32>
    %cst_12 = arith.constant 1.000000e+00 : f32
    %59 = vector.broadcast %cst_12 : f32 to vector<8x1xf32>
    %60 = arith.subf %59, %58 : vector<8x1xf32>
    %c0_13 = arith.constant 0 : index
    %c0_14 = arith.constant 0 : index
    %61 = vector.load %arg7[%c0_13, %c0_14] : memref<8x1xf32, #tpu.memory_space<vmem>>, vector<8x1xf32>
    tpu.vector_store %arg7[%c0_13, %c0_14], %60 {strides = array<i32>} : memref<8x1xf32, #tpu.memory_space<vmem>>, vector<8x1xf32>,
    %c0_15 = arith.constant 0 : index
    %c0_16 = arith.constant 0 : index
    %62 = vector.load %arg4[%c0_15, %c0_16] : memref<4x32xf32, #tpu.memory_space<vmem>>, vector<4x32xf32>
    %cst_17 = arith.constant dense<0.000000e+00> : vector<8x4xf32>
    %63 = tpu.matmul %43, %62, %cst_17 {dimension_numbers = #tpu.dot_dimension_numbers<[1], [1], [0], [0], [0, 0, 1, 0], [], []>} : vector<8x32xf32>, vector<4x32xf32>, vector<8x4xf32> -> vector<8x4xf32>
    %c0_18 = arith.constant 0 : index
    %c0_19 = arith.constant 0 : index
    %64 = vector.load %arg5[%c0_18, %c0_19] : memref<1x4xf32, #tpu.memory_space<vmem>>, vector<1x4xf32>
    %65 = vector.broadcast %64 : vector<1x4xf32> to vector<8x4xf32>
    %66 = arith.addf %63, %65 : vector<8x4xf32>
    %c0_20 = arith.constant 0 : index
    %c0_21 = arith.constant 0 : index
    %67 = vector.load %arg6[%c0_20, %c0_21] : memref<8x4xf32, #tpu.memory_space<vmem>>, vector<8x4xf32>
    tpu.vector_store %arg6[%c0_20, %c0_21], %66 {strides = array<i32>} : memref<8x4xf32, #tpu.memory_space<vmem>>, vector<8x4xf32>,
    return
  }
  func.func @transform_0(%arg0: i32) -> (i32, i32) {
    %c0_i32 = arith.constant 0 : i32
    %c0_i32_0 = arith.constant 0 : i32
    return %arg0, %c0_i32 : i32, i32
  }
  func.func @transform_1(%arg0: i32) -> (i32, i32) {
    %c0_i32 = arith.constant 0 : i32
    %c0_i32_0 = arith.constant 0 : i32
    return %arg0, %c0_i32 : i32, i32
  }
  func.func @transform_2(%arg0: i32) -> (i32, i32) {
    %c0_i32 = arith.constant 0 : i32
    %c0_i32_0 = arith.constant 0 : i32
    %c0_i32_1 = arith.constant 0 : i32
    return %c0_i32, %c0_i32_0 : i32, i32
  }
  func.func @transform_3(%arg0: i32) -> (i32, i32) {
    %c0_i32 = arith.constant 0 : i32
    %c0_i32_0 = arith.constant 0 : i32
    %c0_i32_1 = arith.constant 0 : i32
    return %c0_i32, %c0_i32_0 : i32, i32
  }
  func.func @transform_4(%arg0: i32) -> (i32, i32) {
    %c0_i32 = arith.constant 0 : i32
    %c0_i32_0 = arith.constant 0 : i32
    %c0_i32_1 = arith.constant 0 : i32
    return %c0_i32, %c0_i32_0 : i32, i32
  }
  func.func @transform_5(%arg0: i32) -> (i32, i32) {
    %c0_i32 = arith.constant 0 : i32
    %c0_i32_0 = arith.constant 0 : i32
    return %arg0, %c0_i32 : i32, i32
  }
  func.func @transform_6(%arg0: i32) -> (i32, i32) {
    %c0_i32 = arith.constant 0 : i32
    %c0_i32_0 = arith.constant 0 : i32
    return %arg0, %c0_i32 : i32, i32
  }
}

</mosaic_0001>

<bundles_post_ra>
// kernel: proto_sim_forward.1
= control target key start
LH: loop header
LB: loop body
LE: loop exit
PB: predicated region body
PF: predicated region fallthrough
CT: control target
= control target key end

     0   :  { %12 = vsyncpa [#allocation3], 0  ;;  %s318_s0 = inlined_call_operand.vmem [shape: s32[8,1], index: 0, kind: input, shape index: {}]   ;;  %s319_s1 = inlined_call_operand.vmem [shape: f32[8,32], index: 1, kind: input, shape index: {}]   ;;  %s320_s2 = inlined_call_operand.hbm [shape: f32[4,32], index: 2, kind: input, shape index: {}]   ;;  %s321_s3 = inlined_call_operand.hbm [shape: f32[4,32], index: 3, kind: input, shape index: {}]   ;;  %s322_s4 = inlined_call_operand.vmem [shape: f32[1,4], index: 4, kind: input, shape index: {}]   ;;  %s323_s5 = inlined_call_operand.vmem [shape: f32[8,4], index: 5, kind: output, shape index: {0}]   ;;  %s324_s6 = inlined_call_operand.vmem [shape: f32[8,1], index: 6, kind: output, shape index: {1}]  }
   0x1   :  { %s23_s23 = sshll.u32 %s320_s2, 4  ;;  %s24_s23 = int_to_ptr.hbm [resolvable:$true] %s23_s23 }
   0x2   :  { %13 = vsyncpa [#allocation5], 0  ;;  %s254_s24 = smov [#allocation2]   ;;  %s34_s28 = sshll.u32 %s321_s3, 4  ;;  %s35_s28 = int_to_ptr.hbm [resolvable:$true] %s34_s28 }
   0x3   :  { %s25_s25 = sshll.u32 %s254_s24, 4  ;;  %s255_s29 = smov [#allocation4]   ;;  %s26_s25 = int_to_ptr.vmem [resolvable:$true] %s25_s25 }
   0x4   :  { %28 = dma.hbm_to_vmem [thread:$0]  %s24_s23, 64, %s26_s25, [#allocation3]  }
   0x5   :  { %s36_s30 = sshll.u32 %s255_s29, 4  ;;  %s37_s30 = int_to_ptr.vmem [resolvable:$true] %s36_s30 }
   0x6   :  { %39 = dma.hbm_to_vmem [thread:$0]  %s35_s28, 64, %s37_s30, [#allocation5]  }
   0x7   :  { %250 = dma.done.wait [#allocation3], 64  }
   0x8   :  { %251 = vsyncadd [#allocation3], 4294967232 }
   0x9   :  { %252 = dma.done.wait [#allocation5], 64  }
   0xa   :  { %253 = vsyncadd [#allocation5], 4294967232  ;;  %v256_v0 = vmov 0   ;;  %v50_v1 = vld [vmem:[%s318_s0] sm:$0xff]  ;;  %vm86_vm8 = vcmask 261120   ;;  %vm174_vm15 = vcmask 31744  }
   0xb   :  { %192 = vset.pattern.permute.xlu1 %v256_v0  ;;  %191 = vset.pattern.permute.xlu0 %v256_v0  ;;  %vm69_vm0 = vcmp.eq.s32.totalorder %v50_v1, 2  ;;  %vm53_vm1 = vcmp.eq.s32.totalorder %v50_v1, 0  ;;  %vm77_vm2 = vcmp.eq.s32.totalorder %v50_v1, 3  ;;  %vm61_vm3 = vcmp.eq.s32.totalorder %v50_v1, 1  ;;  %v52_v8 = vld [vmem:[#allocation2] sm:$0xf] }
   0xc   :  { %v70_v2 = vsel %vm69_vm0, 1, %v256_v0  ;;  %v54_v3 = vsel %vm53_vm1, 1, %v256_v0  ;;  %v78_v4 = vsel %vm77_vm2, 1, %v256_v0  ;;  %v62_v5 = vsel %vm61_vm3, 1, %v256_v0  ;;  %v51_v20 = vld [vmem:[%s319_s1] sm:$0xff] }
   0xd   :  { %72 = vperm.xlu1 %192, %v70_v2   ;;  %56 = vperm.xlu0 %191, %v54_v3   ;;  %v59_v9 = vperm.slane %v52_v8, 0  ;;  %v67_v10 = vperm.slane %v52_v8, 1  ;;  %v75_v11 = vperm.slane %v52_v8, 2  ;;  %v83_v14 = vperm.slane %v52_v8, 3  ;;  %v143_v24 = vld [vmem:[#allocation4] sm:$0xf] }
   0xe   :  { %v102_v22 = vmul.f32 %v51_v20, %v51_v20  ;;  %186 = vmatpush.xpose.msk.msra.mxu0 %vm86_vm8, %v143_v24  ;;  %v193_v49 = vld [vmem:[%s322_s4] ss:$0 sm:$0xff] }
  0x10   :  { %v103_v23 = vsel %vm86_vm8, %v102_v22, 0.0 }
  0x15   :  { %80 = vperm.xlu1 %192, %v78_v4   ;;  %64 = vperm.xlu0 %191, %v62_v5  }
  0x7f   :  { %v73_v6 = vpop.permute.xlu1 %72  ;;  %v57_v7 = vpop.permute.xlu0 %56 }
  0x80   :  { %vm58_vm4 = vcmp.eq.s32.totalorder %v57_v7, 1  ;;  %vm74_vm6 = vcmp.eq.s32.totalorder %v73_v6, 1 }
  0x81   :  { %v60_v15 = vsel %vm58_vm4, %v59_v9, 0.0  ;;  %vm141_vm4 = vcmask 7168  }
  0x87   :  { %v81_v12 = vpop.permute.xlu1 %80  ;;  %v65_v13 = vpop.permute.xlu0 %64 }
  0x88   :  { %vm66_vm5 = vcmp.eq.s32.totalorder %v65_v13, 1  ;;  %vm82_vm7 = vcmp.eq.s32.totalorder %v81_v12, 1 }
  0x89   :  { %v68_v16 = vsel %vm66_vm5, %v67_v10, %v60_v15 }
  0x8a   :  { %v76_v17 = vsel %vm74_vm6, %v75_v11, %v68_v16 }
  0x8b   :  { %v84_v18 = vsel %vm82_vm7, %v83_v14, %v76_v17 }
  0x8c   :  { %v85_v19 = vmul.f32 %v84_v18, %v84_v18 }
  0x8e   :  { %v87_v21 = vsel %vm86_vm8, %v85_v19, 0.0 }
  0x8f   :  { %88 = vadd.xlane.f32.xlu2 %v87_v21 }
  0x97   :  { %104 = vadd.xlane.f32.xlu2 %v103_v23 }
 0x102   :  { %v89_v25 = vpop.xlane.xlu2 %88 }
 0x103   :  { %v90_v26 = vmax.f32 %v89_v25, 1e-24 }
 0x105   :  { %194 = vrsqrt.f32 %v90_v26  ;;  %vm97_vm10 = vweird.f32 %v90_v26 }
 0x10a   :  { %v105_v37 = vpop.xlane.xlu2 %104 }
 0x10b   :  { %v195_v27 = vpop.eup %194  ;;  %v110_v38 = vmax.f32 %v105_v37, 1e-24 }
 0x10c   :  { %v92_v28 = vmul.f32 %v195_v27, %v90_v26  ;;  %vm98_vm9 = vweird.f32 %v195_v27 }
 0x10d   :  { %vm99_vm11 = vmor %vm97_vm10, %vm98_vm9  ;;  %196 = vrsqrt.f32 %v110_v38  ;;  %vm117_vm12 = vweird.f32 %v110_v38 }
 0x10e   :  { %v93_v29 = vmul.f32 %v195_v27, %v92_v28 }
 0x110   :  { %v94_v30 = vmul.f32 0.5, %v93_v29 }
 0x112   :  { %v95_v31 = vsub.f32 1.5, %v94_v30 }
 0x113   :  { %v197_v39 = vpop.eup %196 }
 0x114   :  { %v96_v32 = vmul.f32 %v195_v27, %v95_v31  ;;  %v112_v40 = vmul.f32 %v197_v39, %v110_v38  ;;  %vm118_vm13 = vweird.f32 %v197_v39 }
 0x115   :  { %vm119_vm14 = vmor %vm117_vm12, %vm118_vm13 }
 0x116   :  { %v100_v33 = vsel %vm99_vm11, %v195_v27, %v96_v32  ;;  %v113_v41 = vmul.f32 %v197_v39, %v112_v40 }
 0x117   :  { %v101_v34 = vmul.f32 %v100_v33, %v84_v18 }
 0x118   :  { %v114_v42 = vmul.f32 0.5, %v113_v41 }
 0x119   :  { %187 = vmatmul.msk.f32.vlgmr.msra.gmra.mxu0 %vm86_vm8, %v101_v34  ;;  %v106_v35 = vmul.f32 %v101_v34, %v51_v20 }
 0x11a   :  { %v115_v43 = vsub.f32 1.5, %v114_v42 }
 0x11b   :  { %v107_v36 = vsel %vm86_vm8, %v106_v35, 0.0 }
 0x11c   :  { %108 = vadd.xlane.f32.xlu0 %v107_v36  ;;  %v116_v44 = vmul.f32 %v197_v39, %v115_v43 }
 0x11e   :  { %v120_v46 = vsel %vm119_vm14, %v197_v39, %v116_v44 }
 0x18f   :  { %v109_v45 = vpop.xlane.xlu0 %108 }
 0x190   :  { %v121_v47 = vmul.f32 %v120_v46, %v109_v45 }
 0x192   :  { %v122_v48 = vmul.f32 1.442695, %v121_v47 }
 0x194   :  { %198 = vpow2.f32 %v122_v48 }
 0x196   :  { %v171_v50 = vpop.f32.mrf.mxu0 }
 0x197   :  { %v172_v51 = vadd.f32 %v193_v49, %v171_v50 }
 0x199   :  { %175 = vst.msk [vmem:[%s323_s5] sm:$0xff] %vm174_vm15, %v172_v51 }
 0x19a   :  { %v199_v52 = vpop.eup %198 }
 0x19b   :  { %v124_v53 = vadd.f32 1.0, %v199_v52 }
 0x19d   :  { %200 = vrcp.f32 %v124_v53  ;;  %v136_v57 = vand.u32 2147483648, %v124_v53  ;;  %v134_v59 = vand.u32 2147483647, %v124_v53  ;;  %vm130_vm1 = vweird.f32 %v124_v53 }
 0x19f   :  { %v137_v61 = vor.u32 1.1754944e-38, %v136_v57  ;;  %vm135_vm3 = vcmp.eq.f32.partialorder %v134_v59, 8.507059e+37 }
 0x1a3   :  { %v201_v54 = vpop.eup %200 }
 0x1a4   :  { %v126_v55 = vmul.f32 %v201_v54, %v124_v53  ;;  %vm131_vm0 = vweird.f32 %v201_v54 }
 0x1a5   :  { %vm132_vm2 = vmor %vm130_vm1, %vm131_vm0 }
 0x1a6   :  { %v127_v56 = vsub.f32 1.0, %v126_v55 }
 0x1a8   :  { %v128_v58 = vmul.f32 %v201_v54, %v127_v56 }
 0x1aa   :  { %v129_v60 = vadd.f32 %v201_v54, %v128_v58 }
 0x1ac   :  { %v133_v62 = vsel %vm132_vm2, %v201_v54, %v129_v60 }
 0x1ad   :  { %v138_v63 = vsel %vm135_vm3, %v137_v61, %v133_v62 }
 0x1ae   :  { %v140_v0 = vsub.f32 1.0, %v138_v63 }
 0x1b0   :  { %142 = vst.msk [vmem:[%s324_s6] sm:$0xff] %vm141_vm4, %v140_v0 }
 0x1b1   :  { %184 = vsyncpa [#allocation3], 1 }
 0x1b2   :  { %185 = vsyncpa [#allocation5], 1 }

</bundles_post_ra>
